<compile_context>
chip_gen: v6e
topology: v6e:2x2x1
jax: 0.10.0
libtpu: 0.0.40
codegen_flags: <defaults>
</compile_context>

<pallas_src>
import jax
import jax.numpy as jnp
from jax.experimental import pallas as pl
from jax.experimental.pallas import tpu as pltpu


LANE = 128
SUBLANE = 8


def mlp_kernel(lam_ref, x_ref, w1_ref, b1_ref, w2_ref, b2_ref, wo_ref, bo_ref,
               o_ref):
    x = x_ref[...]

    # hidden layer 1: Linear + ReLU (+ dropout == identity in eval mode)
    h = jnp.dot(x, w1_ref[...], preferred_element_type=jnp.float32) + b1_ref[...]
    h = jnp.maximum(h, 0.0)

    # hidden layer 2: Linear + ReLU (+ dropout == identity in eval mode)
    h = jnp.dot(h.astype(w2_ref.dtype), w2_ref[...],
                preferred_element_type=jnp.float32) + b2_ref[...]
    h = jnp.maximum(h, 0.0)

    # output layer: Linear
    y = jnp.dot(h.astype(wo_ref.dtype), wo_ref[...],
                preferred_element_type=jnp.float32) + bo_ref[...]

    # AdaptiveSigmoid: lambda * sigmoid(y)  (EUP-friendly f32 epilogue)
    lam = lam_ref[0]
    o_ref[...] = (lam * jax.nn.sigmoid(y)).astype(o_ref.dtype)


def _round_up(n, m):
    return ((n + m - 1) // m) * m


def _pad_to(a, shape):
    return jnp.pad(a, [(0, s - d) for d, s in zip(a.shape, shape)])


def neural_network_modular(x, w1, b1, w2, b2, wo, bo, lam, *,
                           block_b=512, compute_dtype=jnp.float32):
    """Forward pass of NeuralNetworkModular (eval mode) as a fused Pallas kernel.

    compute_dtype=jnp.bfloat16 halves HBM traffic for the matmul operands on
    v6e/v7x (accumulation stays f32 via preferred_element_type); default f32
    for exact parity with the PyTorch reference.
    """
    B, in_f = x.shape
    h1 = w1.shape[1]
    h2 = w2.shape[1]
    out_f = wo.shape[1]

    # Lane-dense padding of the hidden / output feature dims to multiples of
    # 128 (MXU-native widths, unmasked output stores).  The *input* feature
    # dim is left at its natural width: its block dim equals the full array
    # dim (legal), and this avoids reading 8x padded-zero bytes of x from HBM.
    h1_p = _round_up(h1, LANE)
    h2_p = _round_up(h2, LANE)
    out_p = _round_up(out_f, LANE)

    # Batch tile: big enough to amortize per-step overhead (~0.35 us/step) at
    # realistic batch sizes, collapses to one small tile for tiny demo batches.
    tb = min(block_b, _round_up(B, SUBLANE))
    b_pad = _round_up(B, tb)

    xp = _pad_to(x, (b_pad, in_f)).astype(compute_dtype)        # batch pad only
    w1p = _pad_to(w1, (in_f, h1_p)).astype(compute_dtype)
    w2p = _pad_to(w2, (h1_p, h2_p)).astype(compute_dtype)
    wop = _pad_to(wo, (h2_p, out_p)).astype(compute_dtype)
    # Biases stay f32 (added after the f32-accumulated dot).
    b1p = _pad_to(b1, (1, h1_p)).astype(jnp.float32)
    b2p = _pad_to(b2, (1, h2_p)).astype(jnp.float32)
    bop = _pad_to(bo, (1, out_p)).astype(jnp.float32)
    lam1 = jnp.reshape(lam, (1,)).astype(jnp.float32)

    grid = (b_pad // tb,)

    def resident(shape):
        # Same (0, 0) block every step -> stays VMEM-resident across the grid.
        return pl.BlockSpec(shape, lambda i, lam_ref: (0, 0))

    out_padded = pl.pallas_call(
        mlp_kernel,
        out_shape=jax.ShapeDtypeStruct((b_pad, out_p), jnp.float32),
        grid_spec=pltpu.PrefetchScalarGridSpec(
            num_scalar_prefetch=1,
            grid=grid,
            in_specs=[
                pl.BlockSpec((tb, in_f), lambda i, lam_ref: (i, 0)),
                resident((in_f, h1_p)),
                resident((1, h1_p)),
                resident((h1_p, h2_p)),
                resident((1, h2_p)),
                resident((h2_p, out_p)),
                resident((1, out_p)),
            ],
            out_specs=pl.BlockSpec((tb, out_p), lambda i, lam_ref: (i, 0)),
        ),
        compiler_params=pltpu.CompilerParams(
            dimension_semantics=("parallel",)),
    )(lam1, xp, w1p, b1p, w2p, b2p, wop, bop)

    # Slice away batch padding and lane padding (padded output lanes hold
    # lam*sigmoid(0) garbage by construction).
    return out_padded[:B, :out_f]


def xavier_normal(key, fan_in, fan_out):
    std = (2.0 / (fan_in + fan_out)) ** 0.5
    # Returned already transposed to [in, out] layout for the kernel.
    return std * jax.random.normal(key, (fan_in, fan_out), dtype=jnp.float32)


def linear_bias(key, fan_in, fan_out):
    bound = 1.0 / (fan_in ** 0.5)
    return jax.random.uniform(key, (1, fan_out), dtype=jnp.float32,
                              minval=-bound, maxval=bound)


def reference_forward(x, w1, b1, w2, b2, wo, bo, lam):
    h = jnp.maximum(x @ w1 + b1, 0.0)
    h = jnp.maximum(h @ w2 + b2, 0.0)
    y = h @ wo + bo
    return lam * jax.nn.sigmoid(y)


if __name__ == "__main__":
    B = 8
    IN_F = 16
    H1 = 32
    H2 = 32
    OUT_F = 8

    key = jax.random.PRNGKey(0)
    kx, kw1, kb1, kw2, kb2, kwo, kbo = jax.random.split(key, 7)

    x = jax.random.normal(kx, (B, IN_F), dtype=jnp.float32)

    w1 = xavier_normal(kw1, IN_F, H1)
    b1 = linear_bias(kb1, IN_F, H1)
    w2 = xavier_normal(kw2, H1, H2)
    b2 = linear_bias(kb2, H1, H2)
    wo = xavier_normal(kwo, H2, OUT_F)
    bo = linear_bias(kbo, H2, OUT_F)
    lam = jnp.array(1.0, dtype=jnp.float32)  # AdaptiveSigmoid lambda_init

    out = neural_network_modular(x, w1, b1, w2, b2, wo, bo, lam)
    out = jax.block_until_ready(out)

    ref = reference_forward(x, w1, b1, w2, b2, wo, bo, lam)
    assert out.shape == (B, OUT_F)
    assert jnp.allclose(out, ref, atol=1e-5, rtol=1e-5)

    print("KERNEL_OK")
</pallas_src>

<mosaic_0001>
module attributes {stable_mosaic.version = 11 : i64} {
  func.func @mlp_kernel(%arg0: i32, %arg1: memref<1xf32, #tpu.memory_space<smem>>, %arg2: memref<8x16xf32, #tpu.memory_space<vmem>>, %arg3: memref<16x128xf32, #tpu.memory_space<vmem>>, %arg4: memref<1x128xf32, #tpu.memory_space<vmem>>, %arg5: memref<128x128xf32, #tpu.memory_space<vmem>>, %arg6: memref<1x128xf32, #tpu.memory_space<vmem>>, %arg7: memref<128x128xf32, #tpu.memory_space<vmem>>, %arg8: memref<1x128xf32, #tpu.memory_space<vmem>>, %arg9: memref<8x128xf32, #tpu.memory_space<vmem>>) attributes {dimension_semantics = [#tpu.dimension_semantics<parallel>], iteration_bounds = array<i64: 1>, scalar_prefetch = 1 : i64, scratch_operands = 0 : i64, tpu.core_type = #tpu.core_type<tc>, window_params = [{transform_indices = @transform_0, window_bounds = array<i64: 8, 16>}, {pipeline_mode = #tpu.pipeline_mode<synchronous>, transform_indices = @transform_1, window_bounds = array<i64: 16, 128>}, {pipeline_mode = #tpu.pipeline_mode<synchronous>, transform_indices = @transform_2, window_bounds = array<i64: 1, 128>}, {pipeline_mode = #tpu.pipeline_mode<synchronous>, transform_indices = @transform_3, window_bounds = array<i64: 128, 128>}, {pipeline_mode = #tpu.pipeline_mode<synchronous>, transform_indices = @transform_4, window_bounds = array<i64: 1, 128>}, {pipeline_mode = #tpu.pipeline_mode<synchronous>, transform_indices = @transform_5, window_bounds = array<i64: 128, 128>}, {pipeline_mode = #tpu.pipeline_mode<synchronous>, transform_indices = @transform_6, window_bounds = array<i64: 1, 128>}, {transform_indices = @transform_7, window_bounds = array<i64: 8, 128>}]} {
    %c0 = arith.constant 0 : index
    %c0_0 = arith.constant 0 : index
    %0 = vector.load %arg2[%c0, %c0_0] : memref<8x16xf32, #tpu.memory_space<vmem>>, vector<8x16xf32>
    %c0_1 = arith.constant 0 : index
    %c0_2 = arith.constant 0 : index
    %1 = vector.load %arg3[%c0_1, %c0_2] : memref<16x128xf32, #tpu.memory_space<vmem>>, vector<16x128xf32>
    %cst = arith.constant dense<0.000000e+00> : vector<8x128xf32>
    %2 = tpu.matmul %0, %1, %cst {dimension_numbers = #tpu.dot_dimension_numbers<[1], [0], [0], [1], [0, 0, 1, 1], [], []>} : vector<8x16xf32>, vector<16x128xf32>, vector<8x128xf32> -> vector<8x128xf32>
    %c0_3 = arith.constant 0 : index
    %c0_4 = arith.constant 0 : index
    %3 = vector.load %arg4[%c0_3, %c0_4] : memref<1x128xf32, #tpu.memory_space<vmem>>, vector<1x128xf32>
    %4 = vector.broadcast %3 : vector<1x128xf32> to vector<8x128xf32>
    %5 = arith.addf %2, %4 : vector<8x128xf32>
    %cst_5 = arith.constant 0.000000e+00 : f32
    %6 = vector.broadcast %cst_5 : f32 to vector<8x128xf32>
    %7 = arith.maximumf %5, %6 : vector<8x128xf32>
    %c0_6 = arith.constant 0 : index
    %c0_7 = arith.constant 0 : index
    %8 = vector.load %arg5[%c0_6, %c0_7] : memref<128x128xf32, #tpu.memory_space<vmem>>, vector<128x128xf32>
    %cst_8 = arith.constant dense<0.000000e+00> : vector<8x128xf32>
    %9 = tpu.matmul %7, %8, %cst_8 {dimension_numbers = #tpu.dot_dimension_numbers<[1], [0], [0], [1], [0, 0, 1, 1], [], []>} : vector<8x128xf32>, vector<128x128xf32>, vector<8x128xf32> -> vector<8x128xf32>
    %c0_9 = arith.constant 0 : index
    %c0_10 = arith.constant 0 : index
    %10 = vector.load %arg6[%c0_9, %c0_10] : memref<1x128xf32, #tpu.memory_space<vmem>>, vector<1x128xf32>
    %11 = vector.broadcast %10 : vector<1x128xf32> to vector<8x128xf32>
    %12 = arith.addf %9, %11 : vector<8x128xf32>
    %cst_11 = arith.constant 0.000000e+00 : f32
    %13 = vector.broadcast %cst_11 : f32 to vector<8x128xf32>
    %14 = arith.maximumf %12, %13 : vector<8x128xf32>
    %c0_12 = arith.constant 0 : index
    %c0_13 = arith.constant 0 : index
    %15 = vector.load %arg7[%c0_12, %c0_13] : memref<128x128xf32, #tpu.memory_space<vmem>>, vector<128x128xf32>
    %cst_14 = arith.constant dense<0.000000e+00> : vector<8x128xf32>
    %16 = tpu.matmul %14, %15, %cst_14 {dimension_numbers = #tpu.dot_dimension_numbers<[1], [0], [0], [1], [0, 0, 1, 1], [], []>} : vector<8x128xf32>, vector<128x128xf32>, vector<8x128xf32> -> vector<8x128xf32>
    %c0_15 = arith.constant 0 : index
    %c0_16 = arith.constant 0 : index
    %17 = vector.load %arg8[%c0_15, %c0_16] : memref<1x128xf32, #tpu.memory_space<vmem>>, vector<1x128xf32>
    %18 = vector.broadcast %17 : vector<1x128xf32> to vector<8x128xf32>
    %19 = arith.addf %16, %18 : vector<8x128xf32>
    %c0_17 = arith.constant 0 : index
    %20 = memref.load %arg1[%c0_17] : memref<1xf32, #tpu.memory_space<smem>>
    %21 = arith.negf %19 : vector<8x128xf32>
    %22 = math.exp %21 : vector<8x128xf32>
    %cst_18 = arith.constant 1.000000e+00 : f32
    %23 = vector.broadcast %cst_18 : f32 to vector<8x128xf32>
    %24 = arith.addf %23, %22 : vector<8x128xf32>
    %25 = arith.divf %23, %24 : vector<8x128xf32>
    %26 = vector.broadcast %20 : f32 to vector<8x128xf32>
    %27 = arith.mulf %26, %25 : vector<8x128xf32>
    %c0_19 = arith.constant 0 : index
    %c0_20 = arith.constant 0 : index
    %28 = vector.load %arg9[%c0_19, %c0_20] : memref<8x128xf32, #tpu.memory_space<vmem>>, vector<8x128xf32>
    tpu.vector_store %arg9[%c0_19, %c0_20], %27 {strides = array<i32>} : memref<8x128xf32, #tpu.memory_space<vmem>>, vector<8x128xf32>,
    return
  }
  func.func @transform_0(%arg0: i32, %arg1: memref<1xf32, #tpu.memory_space<smem>>) -> (i32, i32) {
    %c0_i32 = arith.constant 0 : i32
    %c0_i32_0 = arith.constant 0 : i32
    return %arg0, %c0_i32 : i32, i32
  }
  func.func @transform_1(%arg0: i32, %arg1: memref<1xf32, #tpu.memory_space<smem>>) -> (i32, i32) {
    %c0_i32 = arith.constant 0 : i32
    %c0_i32_0 = arith.constant 0 : i32
    %c0_i32_1 = arith.constant 0 : i32
    return %c0_i32, %c0_i32_0 : i32, i32
  }
  func.func @transform_2(%arg0: i32, %arg1: memref<1xf32, #tpu.memory_space<smem>>) -> (i32, i32) {
    %c0_i32 = arith.constant 0 : i32
    %c0_i32_0 = arith.constant 0 : i32
    %c0_i32_1 = arith.constant 0 : i32
    return %c0_i32, %c0_i32_0 : i32, i32
  }
  func.func @transform_3(%arg0: i32, %arg1: memref<1xf32, #tpu.memory_space<smem>>) -> (i32, i32) {
    %c0_i32 = arith.constant 0 : i32
    %c0_i32_0 = arith.constant 0 : i32
    %c0_i32_1 = arith.constant 0 : i32
    return %c0_i32, %c0_i32_0 : i32, i32
  }
  func.func @transform_4(%arg0: i32, %arg1: memref<1xf32, #tpu.memory_space<smem>>) -> (i32, i32) {
    %c0_i32 = arith.constant 0 : i32
    %c0_i32_0 = arith.constant 0 : i32
    %c0_i32_1 = arith.constant 0 : i32
    return %c0_i32, %c0_i32_0 : i32, i32
  }
  func.func @transform_5(%arg0: i32, %arg1: memref<1xf32, #tpu.memory_space<smem>>) -> (i32, i32) {
    %c0_i32 = arith.constant 0 : i32
    %c0_i32_0 = arith.constant 0 : i32
    %c0_i32_1 = arith.constant 0 : i32
    return %c0_i32, %c0_i32_0 : i32, i32
  }
  func.func @transform_6(%arg0: i32, %arg1: memref<1xf32, #tpu.memory_space<smem>>) -> (i32, i32) {
    %c0_i32 = arith.constant 0 : i32
    %c0_i32_0 = arith.constant 0 : i32
    %c0_i32_1 = arith.constant 0 : i32
    return %c0_i32, %c0_i32_0 : i32, i32
  }
  func.func @transform_7(%arg0: i32, %arg1: memref<1xf32, #tpu.memory_space<smem>>) -> (i32, i32) {
    %c0_i32 = arith.constant 0 : i32
    %c0_i32_0 = arith.constant 0 : i32
    return %arg0, %c0_i32 : i32, i32
  }
}

</mosaic_0001>

<bundles_post_ra>
// kernel: tpu_custom_call.1
= control target key start
LH: loop header
LB: loop body
LE: loop exit
PB: predicated region body
PF: predicated region fallthrough
CT: control target
= control target key end

     0   :  { %14 = vsyncpa [#allocation5], 0  ;;  %s751_s0 = inlined_call_operand.<no memory space> [shape: f32[1], index: 0, kind: input, shape index: {}]   ;;  %s752_s1 = inlined_call_operand.hbm [shape: f32[8,16], index: 1, kind: input, shape index: {}]   ;;  %s753_s2 = inlined_call_operand.hbm [shape: f32[16,128], index: 2, kind: input, shape index: {}]   ;;  %s754_s3 = inlined_call_operand.vmem [shape: f32[1,128], index: 3, kind: input, shape index: {}]   ;;  %s755_s4 = inlined_call_operand.hbm [shape: f32[128,128], index: 4, kind: input, shape index: {}]   ;;  %s756_s5 = inlined_call_operand.vmem [shape: f32[1,128], index: 5, kind: input, shape index: {}]   ;;  %s757_s6 = inlined_call_operand.hbm [shape: f32[128,128], index: 6, kind: input, shape index: {}]   ;;  %s758_s7 = inlined_call_operand.vmem [shape: f32[1,128], index: 7, kind: input, shape index: {}]   ;;  %s759_s8 = inlined_call_operand.hbm [shape: f32[8,128], index: 8, kind: output, shape index: {}]  }
   0x1   :  { %15 = vsyncpa [#allocation8], 0 }
   0x2   :  { %16 = vsyncpa [#allocation11], 0 }
   0x3   :  { %17 = vsyncpa [#allocation6], 0  ;;  %s621_s27 = smov [#allocation7]  }
   0x4   :  { %s33_s28 = sshll.u32 %s621_s27, 4  ;;  %s34_s28 = int_to_ptr.vmem [resolvable:$true] %s33_s28 }
   0x5   :  { %s521_s29 = scalar_lea.vmem %s34_s28, 256  ;;  %p526_p1 = scmp.lt.s32.totalorder %s34_s28, %s34_s28 }
   0x6   :  { %p522_p0 = scmp.ne.s32.totalorder %s34_s28, %s521_s29  ;;  %p527_p2 = scmp.lt.s32.totalorder %s521_s29, %s521_s29 }
   0x8   :  { %p528_p3 = por %p527_p2, %p526_p1 }
   0xa   :  { %p529_p4 = pnand %p528_p3, %p522_p0 }
   0xc   :  { %532 = shalt.err (!%p529_p4)
}
   0xd   :  { %s622_s30 = smov 128   ;;  %s623_s9 = smov 8  }
   0xe   :  { %39 = dma.hbm_to_vmem [thread:$0]  %s753_s2, 256, %s34_s28, [#allocation8], %s622_s30, %s622_s30, %s623_s9  }
   0xf   :  { %s624_s12 = smov [#allocation4]   ;;  %s625_s14 = smov [#allocation9]  }
  0x10   :  { %s24_s13 = sshll.u32 %s624_s12, 4  ;;  %s47_s15 = sshll.u32 %s625_s14, 4  ;;  %s25_s13 = int_to_ptr.vmem [resolvable:$true] %s24_s13  ;;  %s48_s15 = int_to_ptr.vmem [resolvable:$true] %s47_s15 }
  0x11   :  { %s541_s16 = scalar_lea.vmem %s25_s13, 128  ;;  %p546_p6 = scmp.lt.s32.totalorder %s25_s13, %s25_s13 }
  0x12   :  { %p542_p5 = scmp.ne.s32.totalorder %s25_s13, %s541_s16  ;;  %p547_p7 = scmp.lt.s32.totalorder %s541_s16, %s541_s16 }
  0x14   :  { %p548_p8 = por %p547_p7, %p546_p6 }
  0x16   :  { %p549_p9 = pnand %p548_p8, %p542_p5 }
  0x18   :  { %552 = shalt.err (!%p549_p9)
}
  0x19   :  { %27 = dma.hbm_to_vmem [thread:$0]  %s752_s1, 128, %s25_s13, [#allocation5]  }
  0x1a   :  { %s561_s19 = scalar_lea.vmem %s48_s15, 2048  ;;  %p566_p11 = scmp.lt.s32.totalorder %s48_s15, %s48_s15 }
  0x1b   :  { %p562_p10 = scmp.ne.s32.totalorder %s48_s15, %s561_s19  ;;  %p567_p12 = scmp.lt.s32.totalorder %s561_s19, %s561_s19 }
  0x1d   :  { %p568_p13 = por %p567_p12, %p566_p11 }
  0x1f   :  { %p569_p0 = pnand %p568_p13, %p562_p10 }
  0x21   :  { %572 = shalt.err (!%p569_p0)
}
  0x22   :  { %53 = dma.hbm_to_vmem [thread:$0]  %s755_s4, 2048, %s48_s15, [#allocation8], %s622_s30, %s622_s30, %s623_s9  }
  0x23   :  { %s626_s21 = smov [#allocation10]  }
  0x24   :  { %s61_s22 = sshll.u32 %s626_s21, 4  ;;  %s62_s22 = int_to_ptr.vmem [resolvable:$true] %s61_s22 }
  0x25   :  { %s581_s23 = scalar_lea.vmem %s62_s22, 2048  ;;  %p586_p2 = scmp.lt.s32.totalorder %s62_s22, %s62_s22 }
  0x26   :  { %p582_p1 = scmp.ne.s32.totalorder %s62_s22, %s581_s23  ;;  %p587_p3 = scmp.lt.s32.totalorder %s581_s23, %s581_s23 }
  0x28   :  { %p588_p4 = por %p587_p3, %p586_p2 }
  0x2a   :  { %p589_p5 = pnand %p588_p4, %p582_p1 }
  0x2c   :  { %592 = shalt.err (!%p589_p5)
}
  0x2d   :  { %67 = dma.hbm_to_vmem [thread:$0]  %s757_s6, 2048, %s62_s22, [#allocation11], %s622_s30, %s622_s30, %s623_s9  }
  0x2e   :  { %613 = dma.done.wait [#allocation5], 128  }
  0x2f   :  { %614 = vsyncadd [#allocation5], 4294967168 }
  0x30   :  { %615 = dma.done.wait [#allocation8], 2304  }
  0x31   :  { %616 = vsyncadd [#allocation8], 4294964992 }
  0x32   :  { %617 = dma.done.wait [#allocation11], 2048  }
  0x33   :  { %618 = vsyncadd [#allocation11], 4294965248  ;;  %v627_v0 = vmov 0.0   ;;  %vm628_vm0 = vmmov 0   ;;  %v84_v1 = vld [vmem:[#allocation7 + $0x8] sm:$0xff]  ;;  %v83_v2 = vld [vmem:[#allocation7] sm:$0xff]  ;;  %v361_v53 = vstv %s751_s0 }
  0x34   :  { %423 = vmatprep.subr.mxu0 %v627_v0  ;;  %427 = vmatprep.mubr.msk.f32.mxu0 %vm628_vm0, %v627_v0  ;;  %v82_v3 = vld [vmem:[#allocation4] sm:$0xff]  ;;  %vm92_vm1 = vcmask 130048   ;;  %v182_v4 = vld [vmem:[#allocation9 + $0x78] sm:$0xff]  ;;  %v181_v5 = vld [vmem:[#allocation9 + $0x70] sm:$0xff] }
  0x35   :  { %430 = vmatprep.subr.mxu1 %v627_v0  ;;  %462 = vmatprep.mubr.msk.f32.mxu1 %vm628_vm0, %v627_v0  ;;  %v180_v6 = vld [vmem:[#allocation9 + $0x68] sm:$0xff]  ;;  %v179_v7 = vld [vmem:[#allocation9 + $0x60] sm:$0xff]  ;;  %v178_v8 = vld [vmem:[#allocation9 + $0x58] sm:$0xff] }
  0x36   :  { %424 = vmatpush3.msra.mxu0 %v84_v1  ;;  %431 = vmatpush3.msra.mxu1 %v182_v4  ;;  %v177_v9 = vld [vmem:[#allocation9 + $0x50] sm:$0xff]  ;;  %v176_v10 = vld [vmem:[#allocation9 + $0x48] sm:$0xff]  ;;  %v175_v11 = vld [vmem:[#allocation9 + $0x40] sm:$0xff] }
  0x37   :  { %425 = vmatprep.subr.mxu0 %v627_v0  ;;  %432 = vmatprep.subr.mxu1 %v627_v0  ;;  %v174_v12 = vld [vmem:[#allocation9 + $0x38] sm:$0xff]  ;;  %v173_v13 = vld [vmem:[#allocation9 + $0x30] sm:$0xff]  ;;  %v172_v14 = vld [vmem:[#allocation9 + $0x28] sm:$0xff] }
  0x38   :  { %426 = vmatpush3.msra.mxu0 %v83_v2  ;;  %433 = vmatpush3.msra.mxu1 %v181_v5  ;;  %v171_v15 = vld [vmem:[#allocation9 + $0x20] sm:$0xff]  ;;  %v170_v16 = vld [vmem:[#allocation9 + $0x18] sm:$0xff]  ;;  %v169_v17 = vld [vmem:[#allocation9 + $0x10] sm:$0xff] }
  0x39   :  { %428 = vmatmul.mubr.msk.f32.vlgmr.msra.gmra.mxu0 %vm92_vm1, %v82_v3  ;;  %434 = vmatprep.subr.mxu1 %v627_v0  ;;  %v168_v18 = vld [vmem:[#allocation9 + $0x8] sm:$0xff]  ;;  %v167_v19 = vld [vmem:[#allocation9] sm:$0xff]  ;;  %v276_v20 = vld [vmem:[#allocation10 + $0x78] sm:$0xff] }
  0x3a   :  { %465 = vmatprep.subr.mxu0 %v627_v0  ;;  %435 = vmatpush3.msra.mxu1 %v180_v6  ;;  %v275_v21 = vld [vmem:[#allocation10 + $0x70] sm:$0xff]  ;;  %v274_v22 = vld [vmem:[#allocation10 + $0x68] sm:$0xff]  ;;  %v273_v23 = vld [vmem:[#allocation10 + $0x60] sm:$0xff] }
  0x3b   :  { %497 = vmatprep.mubr.msk.f32.mxu0 %vm628_vm0, %v627_v0  ;;  %436 = vmatprep.subr.mxu1 %v627_v0  ;;  %v272_v24 = vld [vmem:[#allocation10 + $0x58] sm:$0xff]  ;;  %v271_v25 = vld [vmem:[#allocation10 + $0x50] sm:$0xff]  ;;  %v270_v26 = vld [vmem:[#allocation10 + $0x48] sm:$0xff] }
  0x3c   :  { %437 = vmatpush3.msra.mxu1 %v179_v7  ;;  %466 = vmatpush3.msra.mxu0 %v276_v20  ;;  %v269_v27 = vld [vmem:[#allocation10 + $0x40] sm:$0xff]  ;;  %v268_v28 = vld [vmem:[#allocation10 + $0x38] sm:$0xff]  ;;  %v267_v29 = vld [vmem:[#allocation10 + $0x30] sm:$0xff] }
  0x3d   :  { %438 = vmatprep.subr.mxu1 %v627_v0  ;;  %467 = vmatprep.subr.mxu0 %v627_v0  ;;  %v266_v30 = vld [vmem:[#allocation10 + $0x28] sm:$0xff]  ;;  %v265_v31 = vld [vmem:[#allocation10 + $0x20] sm:$0xff]  ;;  %v264_v32 = vld [vmem:[#allocation10 + $0x18] sm:$0xff] }
  0x3e   :  { %439 = vmatpush3.msra.mxu1 %v178_v8  ;;  %468 = vmatpush3.msra.mxu0 %v275_v21  ;;  %v381_v33 = vld [vmem:[%s754_s3] ss:$0 sm:$0xff]  ;;  %v263_v38 = vld [vmem:[#allocation10 + $0x10] sm:$0xff]  ;;  %v261_v40 = vld [vmem:[#allocation10] sm:$0xff] }
  0x3f   :  { %440 = vmatprep.subr.mxu1 %v627_v0  ;;  %469 = vmatprep.subr.mxu0 %v627_v0  ;;  %v262_v39 = vld [vmem:[#allocation10 + $0x8] sm:$0xff] }
  0x40   :  { %441 = vmatpush3.msra.mxu1 %v177_v9  ;;  %470 = vmatpush3.msra.mxu0 %v274_v22  ;;  %v383_v41 = vld [vmem:[%s756_s5] ss:$0 sm:$0xff]  ;;  %s629_s5 = smov [#allocation12]  }
  0x41   :  { %442 = vmatprep.subr.mxu1 %v627_v0  ;;  %471 = vmatprep.subr.mxu0 %v627_v0  ;;  %v384_v46 = vld [vmem:[%s758_s7] ss:$0 sm:$0xff]  ;;  %s370_s30 = sshll.u32 %s629_s5, 4  ;;  %s371_s30 = int_to_ptr.vmem [resolvable:$true] %s370_s30 }
  0x42   :  { %443 = vmatpush3.msra.mxu1 %v176_v10  ;;  %472 = vmatpush3.msra.mxu0 %v273_v23  ;;  %s593_s9 = scalar_lea.vmem %s371_s30, 128  ;;  %p598_p7 = scmp.lt.s32.totalorder %s371_s30, %s371_s30 }
  0x43   :  { %444 = vmatprep.subr.mxu1 %v627_v0  ;;  %473 = vmatprep.subr.mxu0 %v627_v0  ;;  %p594_p6 = scmp.ne.s32.totalorder %s371_s30, %s593_s9  ;;  %p599_p8 = scmp.lt.s32.totalorder %s593_s9, %s593_s9 }
  0x44   :  { %445 = vmatpush3.msra.mxu1 %v175_v11  ;;  %474 = vmatpush3.msra.mxu0 %v272_v24 }
  0x45   :  { %446 = vmatprep.subr.mxu1 %v627_v0  ;;  %475 = vmatprep.subr.mxu0 %v627_v0  ;;  %p600_p9 = por %p599_p8, %p598_p7 }
  0x46   :  { %447 = vmatpush3.msra.mxu1 %v174_v12  ;;  %476 = vmatpush3.msra.mxu0 %v271_v25 }
  0x47   :  { %448 = vmatprep.subr.mxu1 %v627_v0  ;;  %477 = vmatprep.subr.mxu0 %v627_v0  ;;  %p601_p10 = pnand %p600_p9, %p594_p6 }
  0x48   :  { %449 = vmatpush3.msra.mxu1 %v173_v13  ;;  %478 = vmatpush3.msra.mxu0 %v270_v26 }
  0x49   :  { %450 = vmatprep.subr.mxu1 %v627_v0  ;;  %479 = vmatprep.subr.mxu0 %v627_v0 }
  0x4a   :  { %451 = vmatpush3.msra.mxu1 %v172_v14  ;;  %480 = vmatpush3.msra.mxu0 %v269_v27 }
  0x4b   :  { %452 = vmatprep.subr.mxu1 %v627_v0  ;;  %481 = vmatprep.subr.mxu0 %v627_v0 }
  0x4c   :  { %453 = vmatpush3.msra.mxu1 %v171_v15  ;;  %482 = vmatpush3.msra.mxu0 %v268_v28 }
  0x4d   :  { %454 = vmatprep.subr.mxu1 %v627_v0  ;;  %483 = vmatprep.subr.mxu0 %v627_v0 }
  0x4e   :  { %455 = vmatpush3.msra.mxu1 %v170_v16  ;;  %484 = vmatpush3.msra.mxu0 %v267_v29 }
  0x4f   :  { %456 = vmatprep.subr.mxu1 %v627_v0  ;;  %485 = vmatprep.subr.mxu0 %v627_v0 }
  0x50   :  { %457 = vmatpush3.msra.mxu1 %v169_v17  ;;  %486 = vmatpush3.msra.mxu0 %v266_v30 }
  0x51   :  { %458 = vmatprep.subr.mxu1 %v627_v0  ;;  %487 = vmatprep.subr.mxu0 %v627_v0 }
  0x52   :  { %459 = vmatpush3.msra.mxu1 %v168_v18  ;;  %488 = vmatpush3.msra.mxu0 %v265_v31 }
  0x53   :  { %460 = vmatprep.subr.mxu1 %v627_v0  ;;  %489 = vmatprep.subr.mxu0 %v627_v0 }
  0x54   :  { %461 = vmatpush3.msra.mxu1 %v167_v19  ;;  %490 = vmatpush3.msra.mxu0 %v264_v32 }
  0x55   :  { %491 = vmatprep.subr.mxu0 %v627_v0 }
  0x56   :  { %492 = vmatpush3.msra.mxu0 %v263_v38 }
  0x57   :  { %493 = vmatprep.subr.mxu0 %v627_v0 }
  0x58   :  { %494 = vmatpush3.msra.mxu0 %v262_v39 }
  0x59   :  { %495 = vmatprep.subr.mxu0 %v627_v0 }
  0x5a   :  { %496 = vmatpush3.msra.mxu0 %v261_v40 }
  0xf9   :  { %v162_v34 = vpop.f32.mrf.mxu0 }
  0xfa   :  { %v163_v35 = vadd.f32 %v381_v33, %v162_v34 }
  0xfb   :  { %v429_v36 = vpop.f32.mrf.mxu0 }
  0xfc   :  { %v166_v37 = vmax.f32 %v163_v35, 0.0 }
  0xfe   :  { %463 = vmatmul.mubr.f32.vlgmr.msra.gmra.mxu1 %v166_v37 }
 0x1be   :  { %v256_v42 = vpop.f32.mrf.mxu1 }
 0x1bf   :  { %v257_v43 = vadd.f32 %v383_v41, %v256_v42 }
 0x1c0   :  { %v464_v44 = vpop.f32.mrf.mxu1 }
 0x1c1   :  { %v260_v45 = vmax.f32 %v257_v43, 0.0 }
 0x1c3   :  { %498 = vmatmul.mubr.f32.vlgmr.msra.gmra.mxu0 %v260_v45 }
 0x283   :  { %v350_v47 = vpop.f32.mrf.mxu0 }
 0x284   :  { %v351_v48 = vadd.f32 %v384_v46, %v350_v47 }
 0x285   :  { %v499_v49 = vpop.f32.mrf.mxu0 }
 0x286   :  { %v385_v50 = vmul.f32 -1.442695, %v351_v48 }
 0x288   :  { %509 = vpow2.f32 %v385_v50 }
 0x295   :  { %v510_v51 = vpop.eup %509 }
 0x296   :  { %v358_v52 = vadd.f32 1.0, %v510_v51 }
 0x298   :  { %511 = vrcp.f32 %v358_v52 }
 0x2a5   :  { %v512_v54 = vpop.eup %511 }
 0x2a6   :  { %v362_v55 = vmul.f32 %v512_v54, %v361_v53 }
 0x2a8   :  { %363 = vst [vmem:[#allocation12] sm:$0xff] %v362_v55 }
 0x2a9   :  { %604 = shalt.err (!%p601_p10)
}
 0x2aa   :  { %373 = dma.vmem_to_hbm [thread:$0]  %s371_s30, 128, %s759_s8, [#allocation6]  }
 0x2ab   :  { %619 = dma.done.wait [#allocation6], 128  }
 0x2ac   :  { %620 = vsyncadd [#allocation6], 4294967168 }
 0x2ad   :  { %377 = vsyncpa [#allocation5], 1 }
 0x2ae   :  { %378 = vsyncpa [#allocation8], 1 }
 0x2af   :  { %379 = vsyncpa [#allocation11], 1 }
 0x2b0   :  { %380 = vsyncpa [#allocation6], 1 }

</bundles_post_ra>
